<compile_context>
chip_gen: v7x
topology: tpu7x:2x2x1
jax: 0.10.0
libtpu: 0.0.40
codegen_flags: <defaults>
</compile_context>

<pallas_src>
import jax
import jax.numpy as jnp
from jax.experimental import pallas as pl
from jax.experimental.pallas import tpu as pltpu

IN_DIM = 32
HID = 100
OUT_DIM = 10
BATCH = 8

LANE = 128
SUBLANE = 8
NEG_MASK = -1e30  # masks padded logit columns out of the softmax


def _round_up(n, m):
    return (n + m - 1) // m * m


def _pad2(a, rows, cols):
    r, c = a.shape
    return jnp.pad(a, ((0, rows - r), (0, cols - c)))


def classnet_kernel(x_ref, w1_ref, b1_ref, w2_ref, b2_ref, w3_ref, b3_ref,
                    w4_ref, b4_ref, o_ref):
    # fc1..fc3 + relu: bf16 MXU matmuls with f32 accumulation, f32 bias/relu.
    h = jnp.maximum(
        jnp.dot(x_ref[...], w1_ref[...],
                preferred_element_type=jnp.float32) + b1_ref[...], 0.0)
    h = jnp.maximum(
        jnp.dot(h.astype(jnp.bfloat16), w2_ref[...],
                preferred_element_type=jnp.float32) + b2_ref[...], 0.0)
    h = jnp.maximum(
        jnp.dot(h.astype(jnp.bfloat16), w3_ref[...],
                preferred_element_type=jnp.float32) + b3_ref[...], 0.0)
    # fc4; b4 already contains log(label_proportions) and the padded-column mask.
    logits = jnp.dot(h.astype(jnp.bfloat16), w4_ref[...],
                     preferred_element_type=jnp.float32) + b4_ref[...]
    # own_softmax (prior folded into logits) + log(. + 1e-6)
    m = jnp.max(logits, axis=1, keepdims=True)
    e = jnp.exp(logits - m)
    denom = jnp.sum(e, axis=1, keepdims=True)
    p = e * pl.reciprocal(denom)          # exact (approx=False) — keeps tight tolerance
    o_ref[...] = jnp.log(p + 1e-6)


def classnet_forward(x, params, label_proportions=None, to_emp_softmax=True):
    """params = (w1,b1,w2,b2,w3,b3,w4,b4); weights are (in, out), biases (1, out)."""
    w1, b1, w2, b2, w3, b3, w4, b4 = params
    B, in_dim = x.shape
    hid = w1.shape[1]
    out_dim = w4.shape[1]

    in_p = _round_up(in_dim, LANE)
    hid_p = _round_up(hid, LANE)
    out_p = _round_up(out_dim, LANE)

    # Batch tiling: one lane-dense tile per grid step, weights stay resident.
    tile_b = min(128, _round_up(B, SUBLANE))
    b_p = _round_up(B, tile_b)
    grid = (b_p // tile_b,)

    # Pad + cast matmul operands to bf16 (biases stay f32).
    x_p = _pad2(x.astype(jnp.float32), b_p, in_p).astype(jnp.bfloat16)
    w1p = _pad2(w1, in_p, hid_p).astype(jnp.bfloat16)
    w2p = _pad2(w2, hid_p, hid_p).astype(jnp.bfloat16)
    w3p = _pad2(w3, hid_p, hid_p).astype(jnp.bfloat16)
    w4p = _pad2(w4, hid_p, out_p).astype(jnp.bfloat16)
    b1p = _pad2(b1.reshape(1, -1).astype(jnp.float32), 1, hid_p)
    b2p = _pad2(b2.reshape(1, -1).astype(jnp.float32), 1, hid_p)
    b3p = _pad2(b3.reshape(1, -1).astype(jnp.float32), 1, hid_p)

    # Fold log(prior) into the fc4 bias; mask padded logit columns.
    if label_proportions is not None and to_emp_softmax:
        logprop = jnp.log(label_proportions.reshape(-1).astype(jnp.float32))
    else:
        logprop = jnp.zeros((out_dim,), jnp.float32)   # uniform prior == plain softmax
    b4_eff = b4.reshape(-1).astype(jnp.float32) + logprop
    b4p = jnp.full((1, out_p), NEG_MASK, jnp.float32).at[0, :out_dim].set(b4_eff)

    const = lambda shape: pl.BlockSpec(shape, lambda i: (0, 0))

    out = pl.pallas_call(
        classnet_kernel,
        out_shape=jax.ShapeDtypeStruct((b_p, out_p), jnp.float32),
        grid=grid,
        in_specs=[
            pl.BlockSpec((tile_b, in_p), lambda i: (i, 0)),   # x: batch-tiled
            const((in_p, hid_p)), const((1, hid_p)),
            const((hid_p, hid_p)), const((1, hid_p)),
            const((hid_p, hid_p)), const((1, hid_p)),
            const((hid_p, out_p)), const((1, out_p)),
        ],
        out_specs=pl.BlockSpec((tile_b, out_p), lambda i: (i, 0)),
        compiler_params=pltpu.CompilerParams(
            dimension_semantics=("parallel",)),
    )(x_p, w1p, b1p, w2p, b2p, w3p, b3p, w4p, b4p)

    return out[:B, :out_dim]


def init_params(key, in_dim, hid, out_dim):
    """Deterministic init mimicking nn.Linear default: U(-1/sqrt(fan_in), +1/sqrt(fan_in))."""
    dims = [(in_dim, hid), (hid, hid), (hid, hid), (hid, out_dim)]
    params = []
    for (fi, fo) in dims:
        key, kw, kb = jax.random.split(key, 3)
        bound = 1.0 / jnp.sqrt(jnp.float32(fi))
        w = jax.random.uniform(kw, (fi, fo), jnp.float32, -bound, bound)
        b = jax.random.uniform(kb, (1, fo), jnp.float32, -bound, bound)
        params += [w, b]
    return tuple(params)


def classnet_reference(x, params, label_proportions=None, to_emp_softmax=True):
    """Pure-JAX reference mirroring the kernel's bf16-operand / f32-accumulate matmuls."""
    w1, b1, w2, b2, w3, b3, w4, b4 = params

    def lin(h, w, b):
        return jnp.dot(h.astype(jnp.bfloat16), w.astype(jnp.bfloat16),
                       preferred_element_type=jnp.float32) + b.reshape(1, -1)

    h = jnp.maximum(lin(x, w1, b1), 0.0)
    h = jnp.maximum(lin(h, w2, b2), 0.0)
    h = jnp.maximum(lin(h, w3, b3), 0.0)
    logits = lin(h, w4, b4)
    if label_proportions is not None and to_emp_softmax:
        prop = label_proportions.reshape(1, -1).astype(jnp.float32)
    else:
        prop = jnp.ones((1, logits.shape[1]), jnp.float32)
    m = jnp.max(logits, axis=1, keepdims=True)
    e = jnp.exp(logits - m) * prop
    p = e / jnp.sum(e, axis=1, keepdims=True)
    return jnp.log(p + 1e-6)


if __name__ == "__main__":
    key = jax.random.PRNGKey(0)
    kx, kp, kparams = jax.random.split(key, 3)

    x = jax.random.normal(kx, (BATCH, IN_DIM), jnp.float32)
    # label proportions: positive, sum to 1
    raw = jax.random.uniform(kp, (OUT_DIM,), jnp.float32, 0.1, 1.0)
    label_proportions = raw / jnp.sum(raw)

    params = init_params(kparams, IN_DIM, HID, OUT_DIM)

    # prior-weighted branch
    out = jax.block_until_ready(
        classnet_forward(x, params, label_proportions, to_emp_softmax=True))
    ref = classnet_reference(x, params, label_proportions, to_emp_softmax=True)
    assert out.shape == (BATCH, OUT_DIM)
    assert jnp.allclose(out, ref, atol=1e-3, rtol=1e-3)

    # plain-softmax branch (label_proportions=None)
    out2 = jax.block_until_ready(classnet_forward(x, params, None))
    ref2 = classnet_reference(x, params, None)
    assert out2.shape == (BATCH, OUT_DIM)
    assert jnp.allclose(out2, ref2, atol=1e-3, rtol=1e-3)

    print("KERNEL_OK")
</pallas_src>

<mosaic_0001>
module attributes {stable_mosaic.version = 11 : i64} {
  func.func @classnet_kernel(%arg0: i32, %arg1: memref<8x128xbf16, #tpu.memory_space<vmem>>, %arg2: memref<128x128xbf16, #tpu.memory_space<vmem>>, %arg3: memref<1x128xf32, #tpu.memory_space<vmem>>, %arg4: memref<128x128xbf16, #tpu.memory_space<vmem>>, %arg5: memref<1x128xf32, #tpu.memory_space<vmem>>, %arg6: memref<128x128xbf16, #tpu.memory_space<vmem>>, %arg7: memref<1x128xf32, #tpu.memory_space<vmem>>, %arg8: memref<128x128xbf16, #tpu.memory_space<vmem>>, %arg9: memref<1x128xf32, #tpu.memory_space<vmem>>, %arg10: memref<8x128xf32, #tpu.memory_space<vmem>>) attributes {dimension_semantics = [#tpu.dimension_semantics<parallel>], iteration_bounds = array<i64: 1>, scalar_prefetch = 0 : i64, scratch_operands = 0 : i64, tpu.core_type = #tpu.core_type<tc>, window_params = [{transform_indices = @transform_0, window_bounds = array<i64: 8, 128>}, {pipeline_mode = #tpu.pipeline_mode<synchronous>, transform_indices = @transform_1, window_bounds = array<i64: 128, 128>}, {pipeline_mode = #tpu.pipeline_mode<synchronous>, transform_indices = @transform_2, window_bounds = array<i64: 1, 128>}, {pipeline_mode = #tpu.pipeline_mode<synchronous>, transform_indices = @transform_3, window_bounds = array<i64: 128, 128>}, {pipeline_mode = #tpu.pipeline_mode<synchronous>, transform_indices = @transform_4, window_bounds = array<i64: 1, 128>}, {pipeline_mode = #tpu.pipeline_mode<synchronous>, transform_indices = @transform_5, window_bounds = array<i64: 128, 128>}, {pipeline_mode = #tpu.pipeline_mode<synchronous>, transform_indices = @transform_6, window_bounds = array<i64: 1, 128>}, {pipeline_mode = #tpu.pipeline_mode<synchronous>, transform_indices = @transform_7, window_bounds = array<i64: 128, 128>}, {pipeline_mode = #tpu.pipeline_mode<synchronous>, transform_indices = @transform_8, window_bounds = array<i64: 1, 128>}, {transform_indices = @transform_9, window_bounds = array<i64: 8, 128>}]} {
    %c0 = arith.constant 0 : index
    %c0_0 = arith.constant 0 : index
    %0 = vector.load %arg1[%c0, %c0_0] : memref<8x128xbf16, #tpu.memory_space<vmem>>, vector<8x128xbf16>
    %c0_1 = arith.constant 0 : index
    %c0_2 = arith.constant 0 : index
    %1 = vector.load %arg2[%c0_1, %c0_2] : memref<128x128xbf16, #tpu.memory_space<vmem>>, vector<128x128xbf16>
    %cst = arith.constant dense<0.000000e+00> : vector<8x128xf32>
    %2 = tpu.matmul %0, %1, %cst {dimension_numbers = #tpu.dot_dimension_numbers<[1], [0], [0], [1], [0, 0, 1, 1], [], []>} : vector<8x128xbf16>, vector<128x128xbf16>, vector<8x128xf32> -> vector<8x128xf32>
    %c0_3 = arith.constant 0 : index
    %c0_4 = arith.constant 0 : index
    %3 = vector.load %arg3[%c0_3, %c0_4] : memref<1x128xf32, #tpu.memory_space<vmem>>, vector<1x128xf32>
    %4 = vector.broadcast %3 : vector<1x128xf32> to vector<8x128xf32>
    %5 = arith.addf %2, %4 : vector<8x128xf32>
    %cst_5 = arith.constant 0.000000e+00 : f32
    %6 = vector.broadcast %cst_5 : f32 to vector<8x128xf32>
    %7 = arith.maximumf %5, %6 : vector<8x128xf32>
    %8 = arith.truncf %7 : vector<8x128xf32> to vector<8x128xbf16>
    %c0_6 = arith.constant 0 : index
    %c0_7 = arith.constant 0 : index
    %9 = vector.load %arg4[%c0_6, %c0_7] : memref<128x128xbf16, #tpu.memory_space<vmem>>, vector<128x128xbf16>
    %cst_8 = arith.constant dense<0.000000e+00> : vector<8x128xf32>
    %10 = tpu.matmul %8, %9, %cst_8 {dimension_numbers = #tpu.dot_dimension_numbers<[1], [0], [0], [1], [0, 0, 1, 1], [], []>} : vector<8x128xbf16>, vector<128x128xbf16>, vector<8x128xf32> -> vector<8x128xf32>
    %c0_9 = arith.constant 0 : index
    %c0_10 = arith.constant 0 : index
    %11 = vector.load %arg5[%c0_9, %c0_10] : memref<1x128xf32, #tpu.memory_space<vmem>>, vector<1x128xf32>
    %12 = vector.broadcast %11 : vector<1x128xf32> to vector<8x128xf32>
    %13 = arith.addf %10, %12 : vector<8x128xf32>
    %cst_11 = arith.constant 0.000000e+00 : f32
    %14 = vector.broadcast %cst_11 : f32 to vector<8x128xf32>
    %15 = arith.maximumf %13, %14 : vector<8x128xf32>
    %16 = arith.truncf %15 : vector<8x128xf32> to vector<8x128xbf16>
    %c0_12 = arith.constant 0 : index
    %c0_13 = arith.constant 0 : index
    %17 = vector.load %arg6[%c0_12, %c0_13] : memref<128x128xbf16, #tpu.memory_space<vmem>>, vector<128x128xbf16>
    %cst_14 = arith.constant dense<0.000000e+00> : vector<8x128xf32>
    %18 = tpu.matmul %16, %17, %cst_14 {dimension_numbers = #tpu.dot_dimension_numbers<[1], [0], [0], [1], [0, 0, 1, 1], [], []>} : vector<8x128xbf16>, vector<128x128xbf16>, vector<8x128xf32> -> vector<8x128xf32>
    %c0_15 = arith.constant 0 : index
    %c0_16 = arith.constant 0 : index
    %19 = vector.load %arg7[%c0_15, %c0_16] : memref<1x128xf32, #tpu.memory_space<vmem>>, vector<1x128xf32>
    %20 = vector.broadcast %19 : vector<1x128xf32> to vector<8x128xf32>
    %21 = arith.addf %18, %20 : vector<8x128xf32>
    %cst_17 = arith.constant 0.000000e+00 : f32
    %22 = vector.broadcast %cst_17 : f32 to vector<8x128xf32>
    %23 = arith.maximumf %21, %22 : vector<8x128xf32>
    %24 = arith.truncf %23 : vector<8x128xf32> to vector<8x128xbf16>
    %c0_18 = arith.constant 0 : index
    %c0_19 = arith.constant 0 : index
    %25 = vector.load %arg8[%c0_18, %c0_19] : memref<128x128xbf16, #tpu.memory_space<vmem>>, vector<128x128xbf16>
    %cst_20 = arith.constant dense<0.000000e+00> : vector<8x128xf32>
    %26 = tpu.matmul %24, %25, %cst_20 {dimension_numbers = #tpu.dot_dimension_numbers<[1], [0], [0], [1], [0, 0, 1, 1], [], []>} : vector<8x128xbf16>, vector<128x128xbf16>, vector<8x128xf32> -> vector<8x128xf32>
    %c0_21 = arith.constant 0 : index
    %c0_22 = arith.constant 0 : index
    %27 = vector.load %arg9[%c0_21, %c0_22] : memref<1x128xf32, #tpu.memory_space<vmem>>, vector<1x128xf32>
    %28 = vector.broadcast %27 : vector<1x128xf32> to vector<8x128xf32>
    %29 = arith.addf %26, %28 : vector<8x128xf32>
    %cst_23 = arith.constant dense<0xFF800000> : vector<8xf32>
    %30 = vector.multi_reduction <maximumf>, %29, %cst_23 [1] : vector<8x128xf32> to vector<8xf32>
    %31 = vector.shape_cast %30 : vector<8xf32> to vector<8x1xf32>
    %32 = vector.broadcast %31 : vector<8x1xf32> to vector<8x128xf32>
    %33 = arith.subf %29, %32 : vector<8x128xf32>
    %34 = math.exp %33 : vector<8x128xf32>
    %cst_24 = arith.constant dense<0.000000e+00> : vector<8xf32>
    %35 = vector.multi_reduction <add>, %34, %cst_24 [1] : vector<8x128xf32> to vector<8xf32>
    %36 = vector.shape_cast %35 : vector<8xf32> to vector<8x1xf32>
    %37 = tpu.reciprocal %36 : vector<8x1xf32> -> vector<8x1xf32>
    %38 = vector.broadcast %37 : vector<8x1xf32> to vector<8x128xf32>
    %39 = arith.mulf %34, %38 : vector<8x128xf32>
    %cst_25 = arith.constant 9.99999997E-7 : f32
    %40 = vector.broadcast %cst_25 : f32 to vector<8x128xf32>
    %41 = arith.addf %39, %40 : vector<8x128xf32>
    %42 = math.log %41 : vector<8x128xf32>
    %c0_26 = arith.constant 0 : index
    %c0_27 = arith.constant 0 : index
    %43 = vector.load %arg10[%c0_26, %c0_27] : memref<8x128xf32, #tpu.memory_space<vmem>>, vector<8x128xf32>
    tpu.vector_store %arg10[%c0_26, %c0_27], %42 {strides = array<i32>} : memref<8x128xf32, #tpu.memory_space<vmem>>, vector<8x128xf32>,
    return
  }
  func.func @transform_0(%arg0: i32) -> (i32, i32) {
    %c0_i32 = arith.constant 0 : i32
    %c0_i32_0 = arith.constant 0 : i32
    return %arg0, %c0_i32 : i32, i32
  }
  func.func @transform_1(%arg0: i32) -> (i32, i32) {
    %c0_i32 = arith.constant 0 : i32
    %c0_i32_0 = arith.constant 0 : i32
    %c0_i32_1 = arith.constant 0 : i32
    return %c0_i32, %c0_i32_0 : i32, i32
  }
  func.func @transform_2(%arg0: i32) -> (i32, i32) {
    %c0_i32 = arith.constant 0 : i32
    %c0_i32_0 = arith.constant 0 : i32
    %c0_i32_1 = arith.constant 0 : i32
    return %c0_i32, %c0_i32_0 : i32, i32
  }
  func.func @transform_3(%arg0: i32) -> (i32, i32) {
    %c0_i32 = arith.constant 0 : i32
    %c0_i32_0 = arith.constant 0 : i32
    %c0_i32_1 = arith.constant 0 : i32
    return %c0_i32, %c0_i32_0 : i32, i32
  }
  func.func @transform_4(%arg0: i32) -> (i32, i32) {
    %c0_i32 = arith.constant 0 : i32
    %c0_i32_0 = arith.constant 0 : i32
    %c0_i32_1 = arith.constant 0 : i32
    return %c0_i32, %c0_i32_0 : i32, i32
  }
  func.func @transform_5(%arg0: i32) -> (i32, i32) {
    %c0_i32 = arith.constant 0 : i32
    %c0_i32_0 = arith.constant 0 : i32
    %c0_i32_1 = arith.constant 0 : i32
    return %c0_i32, %c0_i32_0 : i32, i32
  }
  func.func @transform_6(%arg0: i32) -> (i32, i32) {
    %c0_i32 = arith.constant 0 : i32
    %c0_i32_0 = arith.constant 0 : i32
    %c0_i32_1 = arith.constant 0 : i32
    return %c0_i32, %c0_i32_0 : i32, i32
  }
  func.func @transform_7(%arg0: i32) -> (i32, i32) {
    %c0_i32 = arith.constant 0 : i32
    %c0_i32_0 = arith.constant 0 : i32
    %c0_i32_1 = arith.constant 0 : i32
    return %c0_i32, %c0_i32_0 : i32, i32
  }
  func.func @transform_8(%arg0: i32) -> (i32, i32) {
    %c0_i32 = arith.constant 0 : i32
    %c0_i32_0 = arith.constant 0 : i32
    %c0_i32_1 = arith.constant 0 : i32
    return %c0_i32, %c0_i32_0 : i32, i32
  }
  func.func @transform_9(%arg0: i32) -> (i32, i32) {
    %c0_i32 = arith.constant 0 : i32
    %c0_i32_0 = arith.constant 0 : i32
    return %arg0, %c0_i32 : i32, i32
  }
}

</mosaic_0001>

<bundles_post_ra>
// kernel: tpu_custom_call.1
= control target key start
LH: loop header
LB: loop body
LE: loop exit
PB: predicated region body
PF: predicated region fallthrough
CT: control target
= control target key end

     0   :  { %14 = vsyncpa [#allocation3], 0  ;;  %s1117_s0 = inlined_call_operand.hbm [shape: bf16[8,128], index: 0, kind: input, shape index: {}]   ;;  %s1118_s1 = inlined_call_operand.hbm [shape: bf16[128,128], index: 1, kind: input, shape index: {}]   ;;  %s1119_s2 = inlined_call_operand.vmem [shape: f32[1,128], index: 2, kind: input, shape index: {}]   ;;  %s1120_s3 = inlined_call_operand.hbm [shape: bf16[128,128], index: 3, kind: input, shape index: {}]   ;;  %s1121_s4 = inlined_call_operand.vmem [shape: f32[1,128], index: 4, kind: input, shape index: {}]   ;;  %s1122_s5 = inlined_call_operand.hbm [shape: bf16[128,128], index: 5, kind: input, shape index: {}]   ;;  %s1123_s6 = inlined_call_operand.vmem [shape: f32[1,128], index: 6, kind: input, shape index: {}]   ;;  %s1124_s7 = inlined_call_operand.hbm [shape: bf16[128,128], index: 7, kind: input, shape index: {}]   ;;  %s1125_s8 = inlined_call_operand.vmem [shape: f32[1,128], index: 8, kind: input, shape index: {}]   ;;  %s1126_s9 = inlined_call_operand.hbm [shape: f32[8,128], index: 9, kind: output, shape index: {}]  }
   0x1   :  { %15 = vsyncpa [#allocation6], 0 }
   0x2   :  { %16 = vsyncpa [#allocation9], 0 }
   0x3   :  { %17 = vsyncpa [#allocation4], 0  ;;  %s921_s30 = smov [#allocation5]   ;;  %s781_s13 = scalar_lea.hbm %s1118_s1, 1024 }
   0x4   :  { %s33_s10 = sshll.u32 %s921_s30, 4  ;;  %p782_p0 = scmp.ne.s32.totalorder %s1118_s1, %s781_s13  ;;  %s34_s10 = int_to_ptr.vmem [resolvable:$true] %s33_s10 }
   0x5   :  { %p785_p1 = scmp.lt.u32.totalorder %s781_s13, %s1118_s1 }
   0x7   :  { %p787_p2 = pnand %p785_p1, %p782_p0 }
   0x9   :  { %790 = shalt.err (!%p787_p2)
}
   0xa   :  { %s791_s18 = scalar_lea.vmem %s34_s10, 1024  ;;  %p796_p4 = scmp.lt.s32.totalorder %s34_s10, %s34_s10 }
   0xb   :  { %p792_p3 = scmp.ne.s32.totalorder %s34_s10, %s791_s18  ;;  %p797_p5 = scmp.lt.s32.totalorder %s791_s18, %s791_s18 }
   0xd   :  { %p798_p6 = por %p797_p5, %p796_p4 }
   0xf   :  { %p799_p7 = pnand %p798_p6, %p792_p3 }
  0x11   :  { %802 = shalt.err (!%p799_p7)
}
  0x12   :  { %s922_s19 = smov 64   ;;  %s923_s20 = smov 4  }
  0x13   :  { %39 = dma.hbm_to_vmem [thread:$0]  %s1118_s1, 1024, %s34_s10, [#allocation6], %s922_s19, %s922_s19, %s923_s20  }
  0x14   :  { %s924_s23 = smov [#allocation8]   ;;  %s925_s25 = smov [#allocation2]  }
  0x15   :  { %s61_s24 = sshll.u32 %s924_s23, 4  ;;  %s24_s26 = sshll.u32 %s925_s25, 4  ;;  %s62_s24 = int_to_ptr.vmem [resolvable:$true] %s61_s24  ;;  %s25_s26 = int_to_ptr.vmem [resolvable:$true] %s24_s26 }
  0x16   :  { %s803_s29 = scalar_lea.hbm %s1122_s5, 1024 }
  0x17   :  { %p804_p8 = scmp.ne.s32.totalorder %s1122_s5, %s803_s29  ;;  %p807_p9 = scmp.lt.u32.totalorder %s803_s29, %s1122_s5 }
  0x19   :  { %p809_p10 = pnand %p807_p9, %p804_p8 }
  0x1b   :  { %812 = shalt.err (!%p809_p10)
}
  0x1c   :  { %s813_s1 = scalar_lea.vmem %s62_s24, 1024  ;;  %p818_p12 = scmp.lt.s32.totalorder %s62_s24, %s62_s24 }
  0x1d   :  { %p814_p11 = scmp.ne.s32.totalorder %s62_s24, %s813_s1  ;;  %p819_p13 = scmp.lt.s32.totalorder %s813_s1, %s813_s1 }
  0x1f   :  { %p820_p0 = por %p819_p13, %p818_p12 }
  0x21   :  { %p821_p1 = pnand %p820_p0, %p814_p11 }
  0x23   :  { %824 = shalt.err (!%p821_p1)
}
  0x24   :  { %67 = dma.hbm_to_vmem [thread:$0]  %s1122_s5, 1024, %s62_s24, [#allocation9], %s922_s19, %s922_s19, %s923_s20  }
  0x25   :  { %s825_s17 = scalar_lea.hbm %s1117_s0, 64 }
  0x26   :  { %p826_p2 = scmp.ne.s32.totalorder %s1117_s0, %s825_s17  ;;  %p829_p3 = scmp.lt.u32.totalorder %s825_s17, %s1117_s0 }
  0x28   :  { %p831_p4 = pnand %p829_p3, %p826_p2 }
  0x2a   :  { %834 = shalt.err (!%p831_p4)
}
  0x2b   :  { %s835_s25 = scalar_lea.vmem %s25_s26, 64  ;;  %p840_p6 = scmp.lt.s32.totalorder %s25_s26, %s25_s26 }
  0x2c   :  { %p836_p5 = scmp.ne.s32.totalorder %s25_s26, %s835_s25  ;;  %p841_p7 = scmp.lt.s32.totalorder %s835_s25, %s835_s25 }
  0x2e   :  { %p842_p8 = por %p841_p7, %p840_p6 }
  0x30   :  { %p843_p9 = pnand %p842_p8, %p836_p5 }
  0x32   :  { %846 = shalt.err (!%p843_p9)
}
  0x33   :  { %27 = dma.hbm_to_vmem [thread:$0]  %s1117_s0, 64, %s25_s26, [#allocation3]  }
  0x34   :  { %s926_s27 = smov [#allocation7]   ;;  %s927_s29 = smov [#allocation10]  }
  0x35   :  { %s47_s28 = sshll.u32 %s926_s27, 4  ;;  %s75_s30 = sshll.u32 %s927_s29, 4  ;;  %s48_s28 = int_to_ptr.vmem [resolvable:$true] %s47_s28  ;;  %s76_s30 = int_to_ptr.vmem [resolvable:$true] %s75_s30 }
  0x36   :  { %s847_s13 = scalar_lea.hbm %s1120_s3, 1024 }
  0x37   :  { %p848_p10 = scmp.ne.s32.totalorder %s1120_s3, %s847_s13  ;;  %p851_p11 = scmp.lt.u32.totalorder %s847_s13, %s1120_s3 }
  0x39   :  { %p853_p12 = pnand %p851_p11, %p848_p10 }
  0x3b   :  { %856 = shalt.err (!%p853_p12)
}
  0x3c   :  { %s857_s0 = scalar_lea.vmem %s48_s28, 1024  ;;  %p862_p0 = scmp.lt.s32.totalorder %s48_s28, %s48_s28 }
  0x3d   :  { %p858_p13 = scmp.ne.s32.totalorder %s48_s28, %s857_s0  ;;  %p863_p1 = scmp.lt.s32.totalorder %s857_s0, %s857_s0 }
  0x3f   :  { %p864_p2 = por %p863_p1, %p862_p0 }
  0x41   :  { %p865_p3 = pnand %p864_p2, %p858_p13 }
  0x43   :  { %868 = shalt.err (!%p865_p3)
}
  0x44   :  { %53 = dma.hbm_to_vmem [thread:$0]  %s1120_s3, 1024, %s48_s28, [#allocation6], %s922_s19, %s922_s19, %s923_s20  }
  0x45   :  { %s869_s21 = scalar_lea.hbm %s1124_s7, 1024 }
  0x46   :  { %p870_p4 = scmp.ne.s32.totalorder %s1124_s7, %s869_s21  ;;  %p873_p5 = scmp.lt.u32.totalorder %s869_s21, %s1124_s7 }
  0x48   :  { %p875_p6 = pnand %p873_p5, %p870_p4 }
  0x4a   :  { %878 = shalt.err (!%p875_p6)
}
  0x4b   :  { %s879_s24 = scalar_lea.vmem %s76_s30, 1024  ;;  %p884_p8 = scmp.lt.s32.totalorder %s76_s30, %s76_s30 }
  0x4c   :  { %p880_p7 = scmp.ne.s32.totalorder %s76_s30, %s879_s24  ;;  %p885_p9 = scmp.lt.s32.totalorder %s879_s24, %s879_s24 }
  0x4e   :  { %p886_p10 = por %p885_p9, %p884_p8 }
  0x50   :  { %p887_p11 = pnand %p886_p10, %p880_p7 }
  0x52   :  { %890 = shalt.err (!%p887_p11)
}
  0x53   :  { %81 = dma.hbm_to_vmem [thread:$0]  %s1124_s7, 1024, %s76_s30, [#allocation9], %s922_s19, %s922_s19, %s923_s20  }
  0x54   :  { %913 = dma.done.wait [#allocation3], 64  }
  0x55   :  { %914 = vsyncadd [#allocation3], 4294967232 }
  0x56   :  { %915 = dma.done.wait [#allocation6], 2048  }
  0x57   :  { %916 = vsyncadd [#allocation6], 4294965248 }
  0x58   :  { %917 = dma.done.wait [#allocation9], 2048  }
  0x59   :  { %918 = vsyncadd [#allocation9], 4294965248  ;;  %v928_v0 = vmov 0.0   ;;  %vm929_vm0 = vmmov 0   ;;  %v743_v1 = vld [vmem:[#allocation5] sm:$0xff]   ;;  %v744_v2 = vld [vmem:[#allocation5 + $0x8] sm:$0xff]  }
  0x5a   :  { %653 = vmatprep.subr.bf16.mxu0 %v928_v0  ;;  %669 = vmatprep.mubr.msk.bf16.mxu0 %vm929_vm0, %v928_v0  ;;  %v745_v3 = vld [vmem:[#allocation5 + $0x10] sm:$0xff]   ;;  %v751_v4 = vld [vmem:[#allocation7] sm:$0xff]   ;;  %v746_v5 = vld [vmem:[#allocation5 + $0x18] sm:$0xff]  }
  0x5b   :  { %673 = vmatprep.subr.bf16.mxu1 %v928_v0  ;;  %689 = vmatprep.mubr.msk.bf16.mxu1 %vm929_vm0, %v928_v0  ;;  %v752_v6 = vld [vmem:[#allocation7 + $0x8] sm:$0xff]   ;;  %v747_v7 = vld [vmem:[#allocation5 + $0x20] sm:$0xff]   ;;  %v753_v8 = vld [vmem:[#allocation7 + $0x10] sm:$0xff]  }
  0x5c   :  { %654 = vmatpush3.bf16.msra.mxu0 %v743_v1  ;;  %674 = vmatpush3.bf16.msra.mxu1 %v751_v4  ;;  %v748_v9 = vld [vmem:[#allocation5 + $0x28] sm:$0xff]   ;;  %v754_v10 = vld [vmem:[#allocation7 + $0x18] sm:$0xff]   ;;  %v749_v11 = vld [vmem:[#allocation5 + $0x30] sm:$0xff]  }
  0x5d   :  { %655 = vmatprep.subr.bf16.mxu0 %v928_v0  ;;  %675 = vmatprep.subr.bf16.mxu1 %v928_v0  ;;  %v755_v12 = vld [vmem:[#allocation7 + $0x20] sm:$0xff]   ;;  %v750_v13 = vld [vmem:[#allocation5 + $0x38] sm:$0xff]   ;;  %v756_v14 = vld [vmem:[#allocation7 + $0x28] sm:$0xff]  }
  0x5e   :  { %v100_v15 = vld [vmem:[#allocation2] sm:$0xf]  ;;  %v757_v16 = vld [vmem:[#allocation7 + $0x30] sm:$0xff]   ;;  %v759_v18 = vld [vmem:[#allocation8] sm:$0xff]  }
  0x5f   :  { %v758_v17 = vld [vmem:[#allocation7 + $0x38] sm:$0xff]   ;;  %v760_v19 = vld [vmem:[#allocation8 + $0x8] sm:$0xff]   ;;  %v761_v20 = vld [vmem:[#allocation8 + $0x10] sm:$0xff]  }
  0x60   :  { %656 = vmatpush3.bf16.msra.mxu0 %v744_v2  ;;  %676 = vmatpush3.bf16.msra.mxu1 %v752_v6  ;;  %v762_v21 = vld [vmem:[#allocation8 + $0x18] sm:$0xff]   ;;  %v763_v22 = vld [vmem:[#allocation8 + $0x20] sm:$0xff]   ;;  %v764_v23 = vld [vmem:[#allocation8 + $0x28] sm:$0xff]  }
  0x61   :  { %657 = vmatprep.subr.bf16.mxu0 %v928_v0  ;;  %677 = vmatprep.subr.bf16.mxu1 %v928_v0  ;;  %v581_v24 = vld [vmem:[%s1119_s2] ss:$0 sm:$0xff]  ;;  %v765_v32 = vld [vmem:[#allocation8 + $0x30] sm:$0xff]   ;;  %v767_v34 = vld [vmem:[#allocation10] sm:$0xff]  }
  0x62   :  { %v766_v33 = vld [vmem:[#allocation8 + $0x38] sm:$0xff]   ;;  %v768_v35 = vld [vmem:[#allocation10 + $0x8] sm:$0xff]   ;;  %v769_v36 = vld [vmem:[#allocation10 + $0x10] sm:$0xff]  }
  0x63   :  { %v770_v37 = vld [vmem:[#allocation10 + $0x18] sm:$0xff]   ;;  %v771_v38 = vld [vmem:[#allocation10 + $0x20] sm:$0xff]   ;;  %v772_v39 = vld [vmem:[#allocation10 + $0x28] sm:$0xff]  }
  0x64   :  { %658 = vmatpush3.bf16.msra.mxu0 %v745_v3  ;;  %678 = vmatpush3.bf16.msra.mxu1 %v753_v8  ;;  %v590_v40 = vld [vmem:[%s1121_s4] ss:$0 sm:$0xff]  ;;  %v773_v48 = vld [vmem:[#allocation10 + $0x30] sm:$0xff]  }
  0x65   :  { %659 = vmatprep.subr.bf16.mxu0 %v928_v0  ;;  %679 = vmatprep.subr.bf16.mxu1 %v928_v0  ;;  %v774_v49 = vld [vmem:[#allocation10 + $0x38] sm:$0xff]  }
  0x66   :  { %v599_v50 = vld [vmem:[%s1123_s6] ss:$0 sm:$0xff]  ;;  %s930_s6 = smov [#allocation11]  }
  0x67   :  { %v608_v58 = vld [vmem:[%s1125_s8] ss:$0 sm:$0xff]  ;;  %s570_s8 = sshll.u32 %s930_s6, 4  ;;  %s571_s8 = int_to_ptr.vmem [resolvable:$true] %s570_s8 }
  0x68   :  { %660 = vmatpush3.bf16.msra.mxu0 %v746_v5  ;;  %680 = vmatpush3.bf16.msra.mxu1 %v754_v10  ;;  %s891_s11 = scalar_lea.vmem %s571_s8, 128  ;;  %p896_p13 = scmp.lt.s32.totalorder %s571_s8, %s571_s8 }
  0x69   :  { %661 = vmatprep.subr.bf16.mxu0 %v928_v0  ;;  %681 = vmatprep.subr.bf16.mxu1 %v928_v0  ;;  %p892_p12 = scmp.ne.s32.totalorder %s571_s8, %s891_s11  ;;  %p897_p0 = scmp.lt.s32.totalorder %s891_s11, %s891_s11 }
  0x6b   :  { %p898_p1 = por %p897_p0, %p896_p13 }
  0x6c   :  { %662 = vmatpush3.bf16.msra.mxu0 %v747_v7  ;;  %682 = vmatpush3.bf16.msra.mxu1 %v755_v12 }
  0x6d   :  { %663 = vmatprep.subr.bf16.mxu0 %v928_v0  ;;  %683 = vmatprep.subr.bf16.mxu1 %v928_v0  ;;  %p899_p2 = pnand %p898_p1, %p892_p12 }
  0x70   :  { %664 = vmatpush3.bf16.msra.mxu0 %v748_v9  ;;  %684 = vmatpush3.bf16.msra.mxu1 %v756_v14 }
  0x71   :  { %665 = vmatprep.subr.bf16.mxu0 %v928_v0  ;;  %685 = vmatprep.subr.bf16.mxu1 %v928_v0 }
  0x74   :  { %666 = vmatpush3.bf16.msra.mxu0 %v749_v11  ;;  %686 = vmatpush3.bf16.msra.mxu1 %v757_v16 }
  0x75   :  { %667 = vmatprep.subr.bf16.mxu0 %v928_v0  ;;  %687 = vmatprep.subr.bf16.mxu1 %v928_v0 }
  0x78   :  { %668 = vmatpush3.bf16.msra.mxu0 %v750_v13  ;;  %688 = vmatpush3.bf16.msra.mxu1 %v758_v17 }
  0x79   :  { %693 = vmatprep.subr.bf16.mxu0 %v928_v0  ;;  %713 = vmatprep.subr.bf16.mxu1 %v928_v0 }
  0x7b   :  { %670 = vmatmul.mubr.bf16.vlgmr.msra.gmra.mrb[0].mxu0 %v100_v15 }
  0x7c   :  { %709 = vmatprep.mubr.msk.bf16.mxu0 %vm929_vm0, %v928_v0  ;;  %694 = vmatpush3.bf16.msra.mxu0 %v759_v18 }
  0x7d   :  { %695 = vmatprep.subr.bf16.mxu0 %v928_v0 }
  0x80   :  { %696 = vmatpush3.bf16.msra.mxu0 %v760_v19 }
  0x81   :  { %697 = vmatprep.subr.bf16.mxu0 %v928_v0 }
  0x84   :  { %698 = vmatpush3.bf16.msra.mxu0 %v761_v20 }
  0x85   :  { %699 = vmatprep.subr.bf16.mxu0 %v928_v0 }
  0x88   :  { %700 = vmatpush3.bf16.msra.mxu0 %v762_v21 }
  0x89   :  { %701 = vmatprep.subr.bf16.mxu0 %v928_v0 }
  0x8c   :  { %702 = vmatpush3.bf16.msra.mxu0 %v763_v22 }
  0x8d   :  { %703 = vmatprep.subr.bf16.mxu0 %v928_v0 }
  0x90   :  { %704 = vmatpush3.bf16.msra.mxu0 %v764_v23 }
  0x91   :  { %705 = vmatprep.subr.bf16.mxu0 %v928_v0 }
  0x94   :  { %706 = vmatpush3.bf16.msra.mxu0 %v765_v32 }
  0x95   :  { %707 = vmatprep.subr.bf16.mxu0 %v928_v0 }
  0x98   :  { %708 = vmatpush3.bf16.msra.mxu0 %v766_v33 }
 0x14e   :  { %v206_v25 = vpop.f32.mrb[0].mxu0 }
 0x14f   :  { %v207_v26 = vadd.f32 %v581_v24, %v206_v25  ;;  %v671_v27 = vpop.f32.mrb[1].mxu0 }
 0x150   :  { %v209_v28 = vpop.f32.mrb[2].mxu0 }
 0x151   :  { %v212_v29 = vmax.f32 %v207_v26, 0.0  ;;  %v672_v30 = vpop.f32.mrb[3].mxu0 }
 0x153   :  { %v213_v31 = vpack.c.bf16 %v212_v29, %v212_v29 }
 0x155   :  { %690 = vmatmul.mubr.bf16.vlgmr.msra.gmra.mrb[0].mxu1 %v213_v31 }
 0x156   :  { %729 = vmatprep.mubr.msk.bf16.mxu1 %vm929_vm0, %v928_v0  ;;  %714 = vmatpush3.bf16.msra.mxu1 %v767_v34 }
 0x157   :  { %715 = vmatprep.subr.bf16.mxu1 %v928_v0 }
 0x15a   :  { %716 = vmatpush3.bf16.msra.mxu1 %v768_v35 }
 0x15b   :  { %717 = vmatprep.subr.bf16.mxu1 %v928_v0 }
 0x15e   :  { %718 = vmatpush3.bf16.msra.mxu1 %v769_v36 }
 0x15f   :  { %719 = vmatprep.subr.bf16.mxu1 %v928_v0 }
 0x162   :  { %720 = vmatpush3.bf16.msra.mxu1 %v770_v37 }
 0x163   :  { %721 = vmatprep.subr.bf16.mxu1 %v928_v0 }
 0x166   :  { %722 = vmatpush3.bf16.msra.mxu1 %v771_v38 }
 0x167   :  { %723 = vmatprep.subr.bf16.mxu1 %v928_v0 }
 0x16a   :  { %724 = vmatpush3.bf16.msra.mxu1 %v772_v39 }
 0x16b   :  { %725 = vmatprep.subr.bf16.mxu1 %v928_v0 }
 0x16e   :  { %726 = vmatpush3.bf16.msra.mxu1 %v773_v48 }
 0x16f   :  { %727 = vmatprep.subr.bf16.mxu1 %v928_v0 }
 0x172   :  { %728 = vmatpush3.bf16.msra.mxu1 %v774_v49 }
 0x228   :  { %v319_v41 = vpop.f32.mrb[0].mxu1 }
 0x229   :  { %v320_v42 = vadd.f32 %v590_v40, %v319_v41  ;;  %v691_v43 = vpop.f32.mrb[1].mxu1 }
 0x22a   :  { %v322_v44 = vpop.f32.mrb[2].mxu1 }
 0x22b   :  { %v325_v45 = vmax.f32 %v320_v42, 0.0  ;;  %v692_v46 = vpop.f32.mrb[3].mxu1 }
 0x22d   :  { %v326_v47 = vpack.c.bf16 %v325_v45, %v325_v45 }
 0x22f   :  { %710 = vmatmul.mubr.bf16.vlgmr.msra.gmra.mrb[4].mxu0 %v326_v47 }
 0x302   :  { %v432_v51 = vpop.f32.mrb[4].mxu0 }
 0x303   :  { %v433_v52 = vadd.f32 %v599_v50, %v432_v51  ;;  %v711_v53 = vpop.f32.mrb[5].mxu0 }
 0x304   :  { %v435_v54 = vpop.f32.mrb[6].mxu0 }
 0x305   :  { %v438_v55 = vmax.f32 %v433_v52, 0.0  ;;  %v712_v56 = vpop.f32.mrb[7].mxu0 }
 0x307   :  { %v439_v57 = vpack.c.bf16 %v438_v55, %v438_v55 }
 0x309   :  { %730 = vmatmul.mubr.bf16.vlgmr.msra.gmra.mrb[4].mxu1 %v439_v57 }
 0x3dc   :  { %v545_v59 = vpop.f32.mrb[4].mxu1 }
 0x3dd   :  { %v546_v60 = vadd.f32 %v608_v58, %v545_v59  ;;  %v731_v61 = vpop.f32.mrb[5].mxu1 }
 0x3de   :  { %v548_v62 = vpop.f32.mrb[6].mxu1 }
 0x3df   :  { %551 = vmax.xlane.f32.xlu0 %v546_v60  ;;  %v732_v63 = vpop.f32.mrb[7].mxu1 }
 0x46c   :  { %v552_v0 = vpop.xlane.xlu0 %551 }
 0x46d   :  { %v553_v1 = vsub.f32 %v546_v60, %v552_v0 }
 0x46f   :  { %v554_v2 = vmul.f32 1.442695, %v553_v1 }
 0x471   :  { %775 = vpow2.f32 %v554_v2 }
 0x47b   :  { %v776_v3 = vpop.eup %775 }
 0x47c   :  { %556 = vadd.xlane.f32.xlu0 %v776_v3 }
 0x509   :  { %v557_v4 = vpop.xlane.xlu0 %556 }
 0x50a   :  { %777 = vrcp.f32 %v557_v4 }
 0x514   :  { %v778_v5 = vpop.eup %777 }
 0x515   :  { %v559_v6 = vmul.f32 %v778_v5, %v776_v3 }
 0x517   :  { %v560_v7 = vadd.f32 1e-06, %v559_v6 }
 0x519   :  { %779 = vlog2.f32 %v560_v7 }
 0x523   :  { %v780_v8 = vpop.eup %779 }
 0x524   :  { %v562_v9 = vmul.f32 0.6931472, %v780_v8 }
 0x526   :  { %563 = vst [vmem:[#allocation11] sm:$0xff] %v562_v9 }
 0x527   :  { %902 = shalt.err (!%p899_p2)
}
 0x528   :  { %s903_s1 = scalar_lea.hbm %s1126_s9, 128 }
 0x529   :  { %p904_p3 = scmp.ne.s32.totalorder %s1126_s9, %s903_s1  ;;  %p907_p4 = scmp.lt.u32.totalorder %s903_s1, %s1126_s9 }
 0x52b   :  { %p909_p5 = pnand %p907_p4, %p904_p3 }
 0x52d   :  { %912 = shalt.err (!%p909_p5)
}
 0x52e   :  { %573 = dma.vmem_to_hbm [thread:$0]  %s571_s8, 128, %s1126_s9, [#allocation4]  }
 0x52f   :  { %919 = dma.done.wait [#allocation4], 128  }
 0x530   :  { %920 = vsyncadd [#allocation4], 4294967168 }
 0x531   :  { %577 = vsyncpa [#allocation3], 1 }
 0x532   :  { %578 = vsyncpa [#allocation6], 1 }
 0x533   :  { %579 = vsyncpa [#allocation9], 1 }
 0x534   :  { %580 = vsyncpa [#allocation4], 1 }

</bundles_post_ra>
